<compile_context>
chip_gen: v5e
topology: v5e:2x2
jax: 0.10.0
libtpu: 0.0.40
codegen_flags: <defaults>
</compile_context>

<pallas_src>
import functools

import jax
import jax.numpy as jnp
from jax.experimental import pallas as pl
from jax.experimental.pallas import tpu as pltpu


def _upconv_kernel(x_ref, wt_ref, bt_ref, w1_ref, b1_ref, w2_ref, b2_ref, o_ref, *, seq_len):
    x = x_ref[...].astype(jnp.float32)             # (rows, C), rows = batch_block * L
    rows = x.shape[0]
    L = seq_len

    # Row index within each folded sequence (masks the halo rolls so roll never leaks
    # across batch-element boundaries).  Trivial when the tile holds exactly one sequence.
    row = jax.lax.broadcasted_iota(jnp.int32, (rows, 1), 0)
    rmod = row if rows == L else row % L

    # x_prev[r] = x[r-1] (0 at the first row of each sequence),
    # x_next[r] = x[r+1] (0 at the last row of each sequence).  roll sits in the XLU slot.
    x_prev = jnp.where(rmod > 0, pltpu.roll(x, shift=1, axis=0), 0.0)
    x_next = jnp.where(rmod < L - 1, pltpu.roll(x, shift=rows - 1, axis=0), 0.0)

    cdt = wt_ref.dtype                              # matmul operand dtype (bf16 or f32)

    def mm(a, w_ref):
        return jnp.dot(a.astype(cdt), w_ref[...], preferred_element_type=jnp.float32)

    # Fused ConvTranspose1d(k=5, stride=2, pad=2, output_pad=1): one matmul yields both phases.
    #   even: x_next@W0 + x@W2 + x_prev@W4 + b      odd: x_next@W1 + x@W3 + b
    xcat = jnp.concatenate([x_next, x, x_prev], axis=1)            # (rows, 3C)
    y = mm(xcat, wt_ref) + bt_ref[...]                             # (rows, 2C) = [even | odd]

    # 1x1-conv head applied to both phases at once via block-diagonal weights (stays (rows,2C)).
    a = y * jax.nn.sigmoid(y)                                      # SiLU in f32 (EUP)
    h = mm(a, w1_ref) + b1_ref[...]
    a2 = h * jax.nn.sigmoid(h)
    o_ref[...] = (mm(a2, w2_ref) + b2_ref[...]).astype(o_ref.dtype)


def _pick_batch_block(B, L, C, itemsize, budget_bytes=24 << 20):
    """Largest batch_block whose double-buffered in+out tiles fit the VMEM budget and whose
    row-block is sublane aligned (or the whole batch, which satisfies the full-array rule)."""
    per_elem = max(1, (L * C + L * 2 * C) * itemsize * 2)          # in + out, double buffered
    bb = int(max(1, min(B, budget_bytes // per_elem)))
    while bb > 1 and (B % bb != 0 or (bb * L) % 8 != 0):
        bb -= 1
    if bb < B and ((bb * L) % 8 != 0 or B % bb != 0):
        bb = B                                                     # one step; block == full array
    return bb


def upconv1d_block(x, params, *, compute_dtype=jnp.bfloat16, batch_block=None):
    B, L, C = x.shape
    assert L >= 2, "halo masks assume L >= 2"
    wT, bT, w1, b1, w2, b2 = (params[k] for k in ("wT", "bT", "w1", "b1", "w2", "b2"))

    # ---- repack torch-shaped weights into fused matmul (channel-last) form ----
    # ConvTranspose1d weight wT: (Cin, Cout, K=5); tap k acts as  x @ wT[:, :, k].
    W0, W1_, W2_, W3_, W4_ = (wT[:, :, k] for k in range(5))
    wt_pk = jnp.concatenate(
        [jnp.concatenate([W0, W1_], axis=1),                        # x_next taps [W0 | W1]
         jnp.concatenate([W2_, W3_], axis=1),                       # x      taps [W2 | W3]
         jnp.concatenate([W4_, jnp.zeros_like(W4_)], axis=1)],      # x_prev taps [W4 | 0 ]
        axis=0).astype(compute_dtype)                               # (3C, 2C)
    eye2 = jnp.eye(2, dtype=wT.dtype)
    w1_blk = jnp.kron(eye2, jnp.transpose(w1[:, :, 0])).astype(compute_dtype)  # (2C, 2C)
    w2_blk = jnp.kron(eye2, jnp.transpose(w2[:, :, 0])).astype(compute_dtype)  # (2C, 2C)
    bt_pk = jnp.tile(bT, 2).reshape(1, 2 * C)                       # biases stay f32
    b1_pk = jnp.tile(b1, 2).reshape(1, 2 * C)
    b2_pk = jnp.tile(b2, 2).reshape(1, 2 * C)

    # ---- grid: fold batch elements into the sublane axis of each step ----
    itemsize = jnp.dtype(x.dtype).itemsize
    if batch_block is None:
        batch_block = _pick_batch_block(B, L, C, itemsize)
    if B % batch_block != 0 or (batch_block < B and (batch_block * L) % 8 != 0):
        batch_block = B                                             # keep (8,128) rule happy
    rows = batch_block * L

    # VMEM: double-buffered in/out tiles + (double-buffered) weights + headroom; v7x-safe cap.
    cds = jnp.dtype(compute_dtype).itemsize
    weight_bytes = (3 * C * 2 * C + 2 * (2 * C) * (2 * C)) * cds + 3 * (2 * C) * 4
    pipe_bytes = (rows * C + rows * 2 * C) * itemsize * 2
    vmem_limit = int(min(56 << 20, max(32 << 20, pipe_bytes + 2 * weight_bytes + (4 << 20))))

    x2d = x.reshape(B * L, C)                                       # free contiguous reshape
    full2 = lambda g: (0, 0)

    out2d = pl.pallas_call(
        functools.partial(_upconv_kernel, seq_len=L),
        out_shape=jax.ShapeDtypeStruct((B * L, 2 * C), x.dtype),
        grid_spec=pltpu.PrefetchScalarGridSpec(
            num_scalar_prefetch=0,
            grid=(B // batch_block,),
            in_specs=[
                pl.BlockSpec((rows, C), lambda g: (g, 0)),          # x (batch_block seqs folded)
                pl.BlockSpec((3 * C, 2 * C), full2),                # fused convT weight
                pl.BlockSpec((1, 2 * C), full2),                    # convT bias [bT | bT]
                pl.BlockSpec((2 * C, 2 * C), full2),                # head conv1 (block-diag)
                pl.BlockSpec((1, 2 * C), full2),
                pl.BlockSpec((2 * C, 2 * C), full2),                # head conv2 (block-diag)
                pl.BlockSpec((1, 2 * C), full2),
            ],
            out_specs=pl.BlockSpec((rows, 2 * C), lambda g: (g, 0)),  # lane-dense [even|odd]
        ),
        compiler_params=pltpu.CompilerParams(
            dimension_semantics=("parallel",), vmem_limit_bytes=vmem_limit),
    )(x2d, wt_pk, bt_pk, w1_blk, b1_pk, w2_blk, b2_pk)

    # (B*L, 2C) == (B, L, 2, C) == (B, 2L, C): contiguous, no copy.
    return out2d.reshape(B, 2 * L, C)


def reference(x, params):
    """Pure-JAX reference with the scatter formulation of ConvTranspose1d."""
    wT, bT, w1, b1, w2, b2 = (params[k] for k in ("wT", "bT", "w1", "b1", "w2", "b2"))
    B, L, C = x.shape
    Lout = 2 * L
    wt_k = jnp.transpose(wT, (2, 0, 1))
    buf = jnp.zeros((B, Lout + 4, C), jnp.float32)
    for k in range(5):
        pos = jnp.arange(L) * 2 + k                  # output pos (before -padding shift)
        buf = buf.at[:, pos, :].add(jnp.einsum("blc,cd->bld", x, wt_k[k]))
    y = buf[:, 2:Lout + 2, :] + bT                   # padding=2 crop, output_padding=1 kept
    a = jax.nn.silu(y)
    h = jnp.einsum("blc,dc->bld", a, w1[:, :, 0]) + b1
    a2 = jax.nn.silu(h)
    return jnp.einsum("blc,dc->bld", a2, w2[:, :, 0]) + b2


if __name__ == "__main__":
    B, L, C = 4, 8, 32   # dim = 32, seq len 8 -> output (4, 16, 32)
    key = jax.random.PRNGKey(0)
    ks = jax.random.split(key, 7)
    x = jax.random.normal(ks[0], (B, L, C), jnp.float32)
    params = dict(
        wT=0.2 * jax.random.normal(ks[1], (C, C, 5), jnp.float32),  # ConvTranspose1d (in, out, k)
        bT=0.1 * jax.random.normal(ks[2], (C,), jnp.float32),
        w1=0.2 * jax.random.normal(ks[3], (C, C, 1), jnp.float32),  # Conv1d (out, in, 1)
        b1=0.1 * jax.random.normal(ks[4], (C,), jnp.float32),
        w2=0.2 * jax.random.normal(ks[5], (C, C, 1), jnp.float32),  # Conv1d (out, in, 1)
        b2=0.1 * jax.random.normal(ks[6], (C,), jnp.float32),
    )

    ref = reference(x, params)

    # Exact path (f32 matmul operands), whole batch in one grid step -> tight tolerance.
    out_f32 = jax.block_until_ready(
        jax.jit(functools.partial(upconv1d_block, compute_dtype=jnp.float32))(x, params))
    assert out_f32.shape == (B, 2 * L, C), out_f32.shape
    err32 = float(jnp.max(jnp.abs(out_f32 - ref)))
    assert jnp.allclose(out_f32, ref, rtol=1e-4, atol=1e-4), err32

    # Exact path with a multi-step grid (batch_block=2 -> grid of 2) -> tight tolerance.
    out_grid = jax.block_until_ready(
        jax.jit(functools.partial(upconv1d_block, compute_dtype=jnp.float32, batch_block=2))(
            x, params))
    errg = float(jnp.max(jnp.abs(out_grid - ref)))
    assert jnp.allclose(out_grid, ref, rtol=1e-4, atol=1e-4), errg

    # Fast path (bf16 matmul operands, f32 accumulation & activations) -> relaxed tolerance.
    out_bf = jax.block_until_ready(
        jax.jit(functools.partial(upconv1d_block, compute_dtype=jnp.bfloat16))(x, params))
    assert out_bf.shape == (B, 2 * L, C), out_bf.shape
    errbf = float(jnp.max(jnp.abs(out_bf - ref)))
    assert jnp.allclose(out_bf, ref, rtol=5e-2, atol=1e-1), errbf

    print("KERNEL_OK")
</pallas_src>

<mosaic_0001>
module attributes {stable_mosaic.version = 11 : i64} {
  func.func @_upconv_kernel(%arg0: i32, %arg1: memref<32x32xf32, #tpu.memory_space<vmem>>, %arg2: memref<96x64xf32, #tpu.memory_space<vmem>>, %arg3: memref<1x64xf32, #tpu.memory_space<vmem>>, %arg4: memref<64x64xf32, #tpu.memory_space<vmem>>, %arg5: memref<1x64xf32, #tpu.memory_space<vmem>>, %arg6: memref<64x64xf32, #tpu.memory_space<vmem>>, %arg7: memref<1x64xf32, #tpu.memory_space<vmem>>, %arg8: memref<32x64xf32, #tpu.memory_space<vmem>>) attributes {dimension_semantics = [#tpu.dimension_semantics<parallel>], iteration_bounds = array<i64: 1>, scalar_prefetch = 0 : i64, scratch_operands = 0 : i64, tpu.core_type = #tpu.core_type<tc>, window_params = [{transform_indices = @transform_0, window_bounds = array<i64: 32, 32>}, {pipeline_mode = #tpu.pipeline_mode<synchronous>, transform_indices = @transform_1, window_bounds = array<i64: 96, 64>}, {pipeline_mode = #tpu.pipeline_mode<synchronous>, transform_indices = @transform_2, window_bounds = array<i64: 1, 64>}, {pipeline_mode = #tpu.pipeline_mode<synchronous>, transform_indices = @transform_3, window_bounds = array<i64: 64, 64>}, {pipeline_mode = #tpu.pipeline_mode<synchronous>, transform_indices = @transform_4, window_bounds = array<i64: 1, 64>}, {pipeline_mode = #tpu.pipeline_mode<synchronous>, transform_indices = @transform_5, window_bounds = array<i64: 64, 64>}, {pipeline_mode = #tpu.pipeline_mode<synchronous>, transform_indices = @transform_6, window_bounds = array<i64: 1, 64>}, {transform_indices = @transform_7, window_bounds = array<i64: 32, 64>}]} {
    %c0 = arith.constant 0 : index
    %c0_0 = arith.constant 0 : index
    %0 = vector.load %arg1[%c0, %c0_0] : memref<32x32xf32, #tpu.memory_space<vmem>>, vector<32x32xf32>
    %1 = tpu.iota {dimensions = array<i32: 0>} : vector<32x1xi32>
    %c8_i32 = arith.constant 8 : i32
    %c0_i32 = arith.constant 0 : i32
    %2 = arith.cmpi eq, %c8_i32, %c0_i32 : i32
    %c1_i32 = arith.constant 1 : i32
    %3 = arith.select %2, %c1_i32, %c8_i32 : i32
    %4 = vector.broadcast %3 : i32 to vector<32x1xi32>
    %5 = arith.remsi %1, %4 : vector<32x1xi32>
    %c0_i32_1 = arith.constant 0 : i32
    %6 = vector.broadcast %c0_i32_1 : i32 to vector<32x1xi32>
    %7 = arith.cmpi ne, %5, %6 : vector<32x1xi32>
    %c0_i32_2 = arith.constant 0 : i32
    %8 = vector.broadcast %c0_i32_2 : i32 to vector<32x1xi32>
    %9 = arith.cmpi slt, %5, %8 : vector<32x1xi32>
    %c0_i32_3 = arith.constant 0 : i32
    %10 = arith.cmpi slt, %3, %c0_i32_3 : i32
    %11 = vector.broadcast %10 : i1 to vector<32x1xi1>
    %12 = vector.broadcast %11 : vector<32x1xi1> to vector<32x1xi1>
    %13 = arith.xori %9, %12 : vector<32x1xi1>
    %14 = arith.andi %13, %7 : vector<32x1xi1>
    %15 = vector.broadcast %3 : i32 to vector<32x1xi32>
    %16 = arith.addi %5, %15 : vector<32x1xi32>
    %17 = arith.select %14, %16, %5 : vector<32x1xi1>, vector<32x1xi32>
    %c0_i32_4 = arith.constant 0 : i32
    %18 = vector.broadcast %c0_i32_4 : i32 to vector<32x1xi32>
    %19 = arith.cmpi sgt, %17, %18 : vector<32x1xi32>
    %c1_i32_5 = arith.constant 1 : i32
    %20 = tpu.dynamic_rotate %0 by %c1_i32_5 dim 0 : vector<32x32xf32>, i32 -> vector<32x32xf32>
    %cst = arith.constant 0.000000e+00 : f32
    %21 = vector.shape_cast %19 : vector<32x1xi1> to vector<32x1xi1>
    %22 = vector.broadcast %21 : vector<32x1xi1> to vector<32x32xi1>
    %23 = vector.broadcast %cst : f32 to vector<32x32xf32>
    %24 = arith.select %22, %20, %23 : vector<32x32xi1>, vector<32x32xf32>
    %c7_i32 = arith.constant 7 : i32
    %25 = vector.broadcast %c7_i32 : i32 to vector<32x1xi32>
    %26 = arith.cmpi slt, %17, %25 : vector<32x1xi32>
    %c31_i32 = arith.constant 31 : i32
    %27 = tpu.dynamic_rotate %0 by %c31_i32 dim 0 : vector<32x32xf32>, i32 -> vector<32x32xf32>
    %cst_6 = arith.constant 0.000000e+00 : f32
    %28 = vector.shape_cast %26 : vector<32x1xi1> to vector<32x1xi1>
    %29 = vector.broadcast %28 : vector<32x1xi1> to vector<32x32xi1>
    %30 = vector.broadcast %cst_6 : f32 to vector<32x32xf32>
    %31 = arith.select %29, %27, %30 : vector<32x32xi1>, vector<32x32xf32>
    %32 = tpu.concatenate %31, %0, %24 in 1 : vector<32x32xf32>, vector<32x32xf32>, vector<32x32xf32> -> vector<32x96xf32>
    %c0_7 = arith.constant 0 : index
    %c0_8 = arith.constant 0 : index
    %33 = vector.load %arg2[%c0_7, %c0_8] : memref<96x64xf32, #tpu.memory_space<vmem>>, vector<96x64xf32>
    %cst_9 = arith.constant dense<0.000000e+00> : vector<32x64xf32>
    %34 = tpu.matmul %32, %33, %cst_9 {dimension_numbers = #tpu.dot_dimension_numbers<[1], [0], [0], [1], [0, 0, 1, 1], [], []>} : vector<32x96xf32>, vector<96x64xf32>, vector<32x64xf32> -> vector<32x64xf32>
    %c0_10 = arith.constant 0 : index
    %c0_11 = arith.constant 0 : index
    %35 = vector.load %arg3[%c0_10, %c0_11] : memref<1x64xf32, #tpu.memory_space<vmem>>, vector<1x64xf32>
    %36 = vector.broadcast %35 : vector<1x64xf32> to vector<32x64xf32>
    %37 = arith.addf %34, %36 : vector<32x64xf32>
    %38 = arith.negf %37 : vector<32x64xf32>
    %39 = math.exp %38 : vector<32x64xf32>
    %cst_12 = arith.constant 1.000000e+00 : f32
    %40 = vector.broadcast %cst_12 : f32 to vector<32x64xf32>
    %41 = arith.addf %40, %39 : vector<32x64xf32>
    %42 = arith.divf %40, %41 : vector<32x64xf32>
    %43 = arith.mulf %37, %42 : vector<32x64xf32>
    %c0_13 = arith.constant 0 : index
    %c0_14 = arith.constant 0 : index
    %44 = vector.load %arg4[%c0_13, %c0_14] : memref<64x64xf32, #tpu.memory_space<vmem>>, vector<64x64xf32>
    %cst_15 = arith.constant dense<0.000000e+00> : vector<32x64xf32>
    %45 = tpu.matmul %43, %44, %cst_15 {dimension_numbers = #tpu.dot_dimension_numbers<[1], [0], [0], [1], [0, 0, 1, 1], [], []>} : vector<32x64xf32>, vector<64x64xf32>, vector<32x64xf32> -> vector<32x64xf32>
    %c0_16 = arith.constant 0 : index
    %c0_17 = arith.constant 0 : index
    %46 = vector.load %arg5[%c0_16, %c0_17] : memref<1x64xf32, #tpu.memory_space<vmem>>, vector<1x64xf32>
    %47 = vector.broadcast %46 : vector<1x64xf32> to vector<32x64xf32>
    %48 = arith.addf %45, %47 : vector<32x64xf32>
    %49 = arith.negf %48 : vector<32x64xf32>
    %50 = math.exp %49 : vector<32x64xf32>
    %cst_18 = arith.constant 1.000000e+00 : f32
    %51 = vector.broadcast %cst_18 : f32 to vector<32x64xf32>
    %52 = arith.addf %51, %50 : vector<32x64xf32>
    %53 = arith.divf %51, %52 : vector<32x64xf32>
    %54 = arith.mulf %48, %53 : vector<32x64xf32>
    %c0_19 = arith.constant 0 : index
    %c0_20 = arith.constant 0 : index
    %55 = vector.load %arg6[%c0_19, %c0_20] : memref<64x64xf32, #tpu.memory_space<vmem>>, vector<64x64xf32>
    %cst_21 = arith.constant dense<0.000000e+00> : vector<32x64xf32>
    %56 = tpu.matmul %54, %55, %cst_21 {dimension_numbers = #tpu.dot_dimension_numbers<[1], [0], [0], [1], [0, 0, 1, 1], [], []>} : vector<32x64xf32>, vector<64x64xf32>, vector<32x64xf32> -> vector<32x64xf32>
    %c0_22 = arith.constant 0 : index
    %c0_23 = arith.constant 0 : index
    %57 = vector.load %arg7[%c0_22, %c0_23] : memref<1x64xf32, #tpu.memory_space<vmem>>, vector<1x64xf32>
    %58 = vector.broadcast %57 : vector<1x64xf32> to vector<32x64xf32>
    %59 = arith.addf %56, %58 : vector<32x64xf32>
    %c0_24 = arith.constant 0 : index
    %c0_25 = arith.constant 0 : index
    %60 = vector.load %arg8[%c0_24, %c0_25] : memref<32x64xf32, #tpu.memory_space<vmem>>, vector<32x64xf32>
    tpu.vector_store %arg8[%c0_24, %c0_25], %59 {strides = array<i32>} : memref<32x64xf32, #tpu.memory_space<vmem>>, vector<32x64xf32>,
    return
  }
  func.func @transform_0(%arg0: i32) -> (i32, i32) {
    %c0_i32 = arith.constant 0 : i32
    %c0_i32_0 = arith.constant 0 : i32
    return %arg0, %c0_i32 : i32, i32
  }
  func.func @transform_1(%arg0: i32) -> (i32, i32) {
    %c0_i32 = arith.constant 0 : i32
    %c0_i32_0 = arith.constant 0 : i32
    %c0_i32_1 = arith.constant 0 : i32
    return %c0_i32, %c0_i32_0 : i32, i32
  }
  func.func @transform_2(%arg0: i32) -> (i32, i32) {
    %c0_i32 = arith.constant 0 : i32
    %c0_i32_0 = arith.constant 0 : i32
    %c0_i32_1 = arith.constant 0 : i32
    return %c0_i32, %c0_i32_0 : i32, i32
  }
  func.func @transform_3(%arg0: i32) -> (i32, i32) {
    %c0_i32 = arith.constant 0 : i32
    %c0_i32_0 = arith.constant 0 : i32
    %c0_i32_1 = arith.constant 0 : i32
    return %c0_i32, %c0_i32_0 : i32, i32
  }
  func.func @transform_4(%arg0: i32) -> (i32, i32) {
    %c0_i32 = arith.constant 0 : i32
    %c0_i32_0 = arith.constant 0 : i32
    %c0_i32_1 = arith.constant 0 : i32
    return %c0_i32, %c0_i32_0 : i32, i32
  }
  func.func @transform_5(%arg0: i32) -> (i32, i32) {
    %c0_i32 = arith.constant 0 : i32
    %c0_i32_0 = arith.constant 0 : i32
    %c0_i32_1 = arith.constant 0 : i32
    return %c0_i32, %c0_i32_0 : i32, i32
  }
  func.func @transform_6(%arg0: i32) -> (i32, i32) {
    %c0_i32 = arith.constant 0 : i32
    %c0_i32_0 = arith.constant 0 : i32
    %c0_i32_1 = arith.constant 0 : i32
    return %c0_i32, %c0_i32_0 : i32, i32
  }
  func.func @transform_7(%arg0: i32) -> (i32, i32) {
    %c0_i32 = arith.constant 0 : i32
    %c0_i32_0 = arith.constant 0 : i32
    return %arg0, %c0_i32 : i32, i32
  }
}

</mosaic_0001>

<bundles_post_ra>
// kernel: tile.19
= control target key start
LH: loop header
LB: loop body
LE: loop exit
PB: predicated region body
PF: predicated region fallthrough
CT: control target
= control target key end

     0   :  { %vm7_vm0 = vcmask 261120   ;;  %vm13_vm1 = vcmask 523520   ;;  %s39_s0 = inlined_call_operand.vmem [shape: f32[2,32], index: 0, kind: input, shape index: {}]   ;;  %s40_s1 = inlined_call_operand.vmem [shape: f32[1,64], index: 1, kind: output, shape index: {}]  }
   0x1   :  { %v4_v0 = vld [vmem:[%s39_s0] sm:$0x3]  ;;  %s22_s0 = smov 32  }
   0x2   :  { %5 = vst [vmem:[#allocation1] sm:$0x3] %v4_v0 }
   0x9   :  { %v10_v1 = vld [vmem:[#allocation1 + $0x1] sm:$0x1]   ;;  %v6_v2 = vld [vmem:[#allocation1] sm:$0x1]  }
   0xa   :  { %11 = vrot.lane.b32.xlu0 %v10_v1, %s22_s0  ;;  %8 = vst.msk [vmem:[#allocation0] sm:$0x1] %vm7_vm0, %v6_v2  }
  0x7c   :  { %v12_v3 = vpop.permute.xlu0 %11  }
  0x7d   :  { %14 = vst.msk [vmem:[#allocation0] sm:$0x1] %vm13_vm1, %v12_v3  }
  0x84   :  { %v17_v4 = vld [vmem:[#allocation0] sm:$0x1] }
  0x85   :  { %20 = vst [vmem:[%s40_s1] sm:$0x1] %v17_v4 }

// kernel: tile.18
= control target key start
LH: loop header
LB: loop body
LE: loop exit
PB: predicated region body
PF: predicated region fallthrough
CT: control target
= control target key end

     0   :  { %s22_s0 = inlined_call_operand.vmem [shape: f32[32], index: 0, kind: input, shape index: {}]   ;;  %s23_s1 = inlined_call_operand.vmem [shape: f32[2,32], index: 1, kind: output, shape index: {}]  }
   0x1   :  { %v4_v0 = vld [vmem:[%s22_s0] ss:$0 sm:$0xff] }
   0x2   :  { %5 = vst [vmem:[%s23_s1] sm:$0x3] %v4_v0 }

// kernel: upconv1d_block.1
= control target key start
LH: loop header
LB: loop body
LE: loop exit
PB: predicated region body
PF: predicated region fallthrough
CT: control target
= control target key end

     0   :  { %v30_v0 = vlaneseq  ;;  %s576_s30 = smov 32   ;;  %s577_s19 = smov 64   ;;  %vm165_vm8 = vcmask 261120   ;;  %vm170_vm9 = vcmask 523264   ;;  %vm191_vm10 = vcmask 785408   ;;  %s847_s0 = inlined_call_operand.vmem [shape: f32[32,32], index: 0, kind: input, shape index: {}]   ;;  %s848_s1 = inlined_call_operand.vmem [shape: f32[96,64], index: 1, kind: input, shape index: {}]   ;;  %s849_s2 = inlined_call_operand.vmem [shape: f32[1,64], index: 2, kind: input, shape index: {}]   ;;  %s850_s4 = inlined_call_operand.vmem [shape: f32[1,64], index: 4, kind: input, shape index: {}]   ;;  %s851_s3 = inlined_call_operand.vmem [shape: f32[64,64], index: 3, kind: input, shape index: {}]   ;;  %s852_s6 = inlined_call_operand.vmem [shape: f32[1,64], index: 6, kind: input, shape index: {}]   ;;  %s853_s5 = inlined_call_operand.vmem [shape: f32[64,64], index: 5, kind: input, shape index: {}]   ;;  %s854_s7 = inlined_call_operand.vmem [shape: f32[32,64], index: 7, kind: output, shape index: {}]  }
   0x1   :  { %v621_v1 = vld [vmem:[%s847_s0 + $0x8] sm:$0xff]  ;;  %v626_v2 = vld [vmem:[%s847_s0] sm:$0xff]  ;;  %v631_v3 = vld [vmem:[%s847_s0 + $0x18] sm:$0xff] }
   0x2   :  { %139 = vrot.lane.b32.xlu1 %v621_v1, %s576_s30  ;;  %137 = vrot.lane.b32.xlu0 %v626_v2, %s576_s30  ;;  %v87_v4 = vrot.slane %v626_v2, 7  ;;  %v641_v5 = vld [vmem:[%s847_s0 + $0x10] sm:$0xff]  ;;  %v186_v6 = vld [vmem:[%s848_s1 + $0x58] sm:$0xff]  ;;  %v88_v7 = vrot.slane %v621_v1, 7  ;;  %v647_v8 = vshrl.u32 %v30_v0, 7  ;;  %v90_v9 = vrot.slane %v631_v3, 7 }
   0x3   :  { %141 = vrot.lane.b32.xlu2 %v641_v5, %s576_s30  ;;  %208 = vmatpush.msra.mxu0 %v186_v6  ;;  %v185_v10 = vld [vmem:[%s848_s1 + $0x50] sm:$0xff]  ;;  %v184_v11 = vld [vmem:[%s848_s1 + $0x48] sm:$0xff]  ;;  %v89_v16 = vrot.slane %v641_v5, 7  ;;  %v183_v18 = vld [vmem:[%s848_s1 + $0x40] sm:$0xff]  ;;  %v113_v32 = vrot.slane %v621_v1, 1  ;;  %v112_v33 = vrot.slane %v626_v2, 1 }
   0x4   :  { %527 = vmatpush.msra.mxu3 %v186_v6  ;;  %v39_v12 = vand.u32 7, %v647_v8  ;;  %vm91_vm0 = vcmp.lt.s32.totalorder %v647_v8, 1  ;;  %v32_v13 = vadd.s32 8, %v647_v8  ;;  %v662_v14 = vadd.s32 24, %v647_v8  ;;  %v182_v24 = vld [vmem:[%s848_s1 + $0x38] sm:$0xff]  ;;  %v181_v27 = vld [vmem:[%s848_s1 + $0x30] sm:$0xff] }
   0x5   :  { %209 = vmatpush.msra.mxu0 %v185_v10  ;;  %v95_v15 = vsel %vm91_vm0, %v90_v9, %v87_v4  ;;  %v668_v17 = vadd.s32 16, %v647_v8  ;;  %v94_v20 = vsel %vm91_vm0, %v87_v4, %v88_v7  ;;  %v93_v23 = vsel %vm91_vm0, %v88_v7, %v89_v16  ;;  %v180_v29 = vld [vmem:[%s848_s1 + $0x28] sm:$0xff]  ;;  %v179_v39 = vld [vmem:[%s848_s1 + $0x20] sm:$0xff]  ;;  %v178_v40 = vld [vmem:[%s848_s1 + $0x18] sm:$0xff] }
   0x6   :  { %528 = vmatpush.msra.mxu3 %v185_v10  ;;  %vm83_vm1 = vcmp.gt.s32.totalorder %v39_v12, 0  ;;  %v46_v19 = vand.u32 7, %v32_v13  ;;  %v60_v25 = vand.u32 7, %v662_v14  ;;  %v92_v30 = vsel %vm91_vm0, %v89_v16, %v90_v9  ;;  %v177_v43 = vld [vmem:[%s848_s1 + $0x10] sm:$0xff]  ;;  %v176_v44 = vld [vmem:[%s848_s1 + $0x8] sm:$0xff]  ;;  %v175_v45 = vld [vmem:[%s848_s1] sm:$0xff] }
   0x7   :  { %210 = vmatpush.msra.mxu0 %v184_v11  ;;  %v104_v21 = vsel %vm83_vm1, %v95_v15, 0.0  ;;  %v53_v22 = vand.u32 7, %v668_v17  ;;  %v114_v34 = vrot.slane %v641_v5, 1  ;;  %vm116_vm5 = vcmp.lt.s32.totalorder %v647_v8, 7  ;;  %v320_v2 = vld [vmem:[%s851_s3 + $0x38] sm:$0xff]  ;;  %v318_v4 = vld [vmem:[%s851_s3 + $0x28] sm:$0xff] }
   0x8   :  { %529 = vmatpush.msra.mxu3 %v184_v11  ;;  %vm84_vm2 = vcmp.gt.s32.totalorder %v46_v19, 0  ;;  %vm86_vm4 = vcmp.gt.s32.totalorder %v60_v25, 0  ;;  %vm702_vm6 = vcmp.lt.s32.totalorder %v46_v19, 7  ;;  %v119_v37 = vsel %vm116_vm5, %v112_v33, %v113_v32  ;;  %345 = vmatpush.msra.mxu1 %v320_v2  ;;  %v317_v5 = vld [vmem:[%s851_s3 + $0x20] sm:$0xff]  ;;  %v316_v6 = vld [vmem:[%s851_s3 + $0x18] sm:$0xff]  ;;  %v315_v8 = vld [vmem:[%s851_s3 + $0x10] sm:$0xff] }
   0x9   :  { %211 = vmatpush.msra.mxu0 %v183_v18  ;;  %v105_v26 = vsel %vm84_vm2, %v94_v20, 0.0  ;;  %vm85_vm3 = vcmp.gt.s32.totalorder %v53_v22, 0  ;;  %v107_v31 = vsel %vm86_vm4, %v92_v30, 0.0  ;;  %v118_v36 = vsel %vm116_vm5, %v113_v32, %v114_v34  ;;  %v541_v7 = vld [vmem:[%s849_s2] ss:$0 sm:$0xff]  ;;  %v314_v9 = vld [vmem:[%s851_s3 + $0x8] sm:$0xff] }
   0xa   :  { %153 = vrot.lane.b32.xlu0 %v104_v21, %s577_s19  ;;  %530 = vmatpush.msra.mxu3 %v183_v18  ;;  %v106_v28 = vsel %vm85_vm3, %v93_v23, 0.0  ;;  %v130_v38 = vsel %vm702_vm6, %v118_v36, 0.0  ;;  %v115_v41 = vrot.slane %v631_v3, 1  ;;  %vm108_vm7 = vcmp.lt.s32.totalorder %v39_v12, 7  ;;  %v313_v12 = vld [vmem:[%s851_s3] sm:$0xff] }
   0xb   :  { %155 = vrot.lane.b32.xlu1 %v105_v26, %s577_s19  ;;  %212 = vmatpush.msra.mxu0 %v182_v24  ;;  %v129_v49 = vsel %vm108_vm7, %v119_v37, 0.0  ;;  %vm110_vm11 = vcmp.lt.s32.totalorder %v53_v22, 7  ;;  %vm111_vm12 = vcmp.lt.s32.totalorder %v60_v25, 7 }
   0xc   :  { %157 = vrot.lane.b32.xlu2 %v106_v28, %s577_s19  ;;  %531 = vmatpush.msra.mxu3 %v182_v24  ;;  %v117_v42 = vsel %vm116_vm5, %v114_v34, %v115_v41  ;;  %v120_v46 = vsel %vm116_vm5, %v115_v41, %v112_v33 }
   0xd   :  { %213 = vmatpush.msra.mxu0 %v181_v27  ;;  %v131_v57 = vsel %vm110_vm11, %v117_v42, 0.0  ;;  %v132_v61 = vsel %vm111_vm12, %v120_v46, 0.0 }
   0xe   :  { %532 = vmatpush.msra.mxu3 %v181_v27 }
   0xf   :  { %214 = vmatpush.msra.mxu0 %v180_v29 }
  0x10   :  { %533 = vmatpush.msra.mxu3 %v180_v29 }
  0x11   :  { %215 = vmatpush.msra.mxu0 %v179_v39 }
  0x12   :  { %143 = vrot.lane.b32.xlu0 %v631_v3, %s576_s30  ;;  %534 = vmatpush.msra.mxu3 %v179_v39  ;;  %v319_v3 = vld [vmem:[%s851_s3 + $0x30] sm:$0xff] }
  0x13   :  { %159 = vrot.lane.b32.xlu1 %v107_v31, %s577_s19  ;;  %216 = vmatpush.msra.mxu0 %v178_v40 }
  0x14   :  { %535 = vmatpush.msra.mxu3 %v178_v40  ;;  %346 = vmatpush.msra.mxu1 %v319_v3 }
  0x15   :  { %217 = vmatpush.msra.mxu0 %v177_v43 }
  0x16   :  { %536 = vmatpush.msra.mxu3 %v177_v43  ;;  %347 = vmatpush.msra.mxu1 %v318_v4 }
  0x17   :  { %218 = vmatpush.msra.mxu0 %v176_v44 }
  0x18   :  { %537 = vmatpush.msra.mxu3 %v176_v44  ;;  %348 = vmatpush.msra.mxu1 %v317_v5 }
  0x19   :  { %219 = vmatpush.msra.mxu0 %v175_v45 }
  0x1a   :  { %538 = vmatpush.msra.mxu3 %v175_v45  ;;  %349 = vmatpush.msra.mxu1 %v316_v6 }
  0x1c   :  { %350 = vmatpush.msra.mxu1 %v315_v8 }
  0x1e   :  { %351 = vmatpush.msra.mxu1 %v314_v9 }
  0x20   :  { %352 = vmatpush.msra.mxu1 %v313_v12  ;;  %v452_v12 = vld [vmem:[%s853_s5 + $0x30] sm:$0xff] }
  0x5d   :  { %v142_v50 = vpop.permute.xlu2 %141 }
  0x5e   :  { %v168_v58 = vsel %vm165_vm8, %v131_v57, %v142_v50 }
  0x66   :  { %v158_v59 = vpop.permute.xlu2 %157 }
  0x67   :  { %v173_v60 = vsel %vm170_vm9, %v168_v58, %v158_v59 }
  0x74   :  { %v140_v47 = vpop.permute.xlu1 %139  ;;  %v138_v48 = vpop.permute.xlu0 %137 }
  0x75   :  { %v166_v51 = vsel %vm165_vm8, %v129_v49, %v138_v48  ;;  %v167_v53 = vsel %vm165_vm8, %v130_v38, %v140_v47 }
  0x7c   :  { %v154_v52 = vpop.permute.xlu0 %153 }
  0x7d   :  { %v156_v54 = vpop.permute.xlu1 %155  ;;  %v171_v55 = vsel %vm170_vm9, %v166_v51, %v154_v52 }
  0x7e   :  { %507 = vmatmul.msk.f32.vlgmr.msra.gmra.mxu0 %vm191_vm10, %v171_v55  ;;  %v172_v56 = vsel %vm170_vm9, %v167_v53, %v156_v54 }
  0x7f   :  { %508 = vmatmul.msk.f32.vlgmr.msra.gmra.mxu3 %vm191_vm10, %v172_v56 }
  0x84   :  { %v144_v62 = vpop.permute.xlu0 %143 }
  0x85   :  { %v169_v63 = vsel %vm165_vm8, %v132_v61, %v144_v62  ;;  %v160_v0 = vpop.permute.xlu1 %159 }
  0x86   :  { %v174_v1 = vsel %vm170_vm9, %v169_v63, %v160_v0 }
  0x87   :  { %509 = vmatmul.msk.f32.gmra.mxu3 %vm191_vm10, %v173_v60 }
  0x8f   :  { %510 = vmatmul.msk.f32.gmra.mxu3 %vm191_vm10, %v174_v1 }
  0xfb   :  { %v221_v10 = vpop.f32.mrf.mxu0 }
  0xfc   :  { %v222_v11 = vadd.f32 %v541_v7, %v221_v10 }
  0xfe   :  { %v511_v13 = vmul.f32 -1.442695, %v222_v11 }
 0x100   :  { %544 = vpow2.f32 %v511_v13  ;;  %v451_v13 = vld [vmem:[%s853_s5 + $0x28] sm:$0xff] }
 0x102   :  { %v224_v14 = vpop.f32.mrf.mxu3 }
 0x103   :  { %v225_v15 = vadd.f32 %v541_v7, %v224_v14  ;;  %v450_v14 = vld [vmem:[%s853_s5 + $0x20] sm:$0xff] }
 0x105   :  { %v512_v16 = vmul.f32 -1.442695, %v225_v15 }
 0x106   :  { %v545_v17 = vpop.eup %544 }
 0x107   :  { %v245_v18 = vadd.f32 1.0, %v545_v17  ;;  %546 = vpow2.f32 %v512_v16  ;;  %v542_v16 = vld [vmem:[%s850_s4] ss:$0 sm:$0xff]  ;;  %v448_v17 = vld [vmem:[%s853_s5 + $0x10] sm:$0xff] }
 0x109   :  { %548 = vrcp.f32 %v245_v18  ;;  %v260_v28 = vand.u32 2147483648, %v245_v18  ;;  %v258_v31 = vand.u32 2147483647, %v245_v18  ;;  %vm254_vm14 = vweird.f32 %v245_v18 }
 0x10a   :  { %v227_v19 = vpop.f32.mrf.mxu3 }
 0x10b   :  { %v777_v20 = vadd.f32 %v541_v7, %v227_v19  ;;  %v261_v37 = vor.u32 1.1754944e-38, %v260_v28  ;;  %vm259_vm0 = vcmp.eq.f32.partialorder %v258_v31, 8.507059e+37 }
 0x10d   :  { %v547_v21 = vpop.eup %546  ;;  %v513_v22 = vmul.f32 -1.442695, %v777_v20 }
 0x10e   :  { %v246_v23 = vadd.f32 1.0, %v547_v21  ;;  %v446_v21 = vld [vmem:[%s853_s5] sm:$0xff] }
 0x10f   :  { %v549_v24 = vpop.eup %548  ;;  %550 = vpow2.f32 %v513_v22 }
 0x110   :  { %v250_v25 = vmul.f32 %v549_v24, %v245_v18  ;;  %552 = vrcp.f32 %v246_v23  ;;  %vm255_vm13 = vweird.f32 %v549_v24  ;;  %v275_v43 = vand.u32 2147483648, %v246_v23  ;;  %v447_v18 = vld [vmem:[%s853_s5 + $0x8] sm:$0xff] }
 0x111   :  { %vm256_vm15 = vmor %vm254_vm14, %vm255_vm13  ;;  %v273_v45 = vand.u32 2147483647, %v246_v23  ;;  %vm269_vm2 = vweird.f32 %v246_v23 }
 0x112   :  { %v251_v26 = vsub.f32 1.0, %v250_v25  ;;  %v230_v27 = vpop.f32.mrf.mxu3  ;;  %v276_v49 = vor.u32 1.1754944e-38, %v275_v43 }
 0x113   :  { %v780_v29 = vadd.f32 %v541_v7, %v230_v27  ;;  %vm274_vm4 = vcmp.eq.f32.partialorder %v273_v45, 8.507059e+37 }
 0x114   :  { %v252_v30 = vmul.f32 %v549_v24, %v251_v26 }
 0x115   :  { %v551_v32 = vpop.eup %550  ;;  %v514_v33 = vmul.f32 -1.442695, %v780_v29 }
 0x116   :  { %v553_v34 = vpop.eup %552  ;;  %v253_v35 = vadd.f32 %v549_v24, %v252_v30  ;;  %v247_v36 = vadd.f32 1.0, %v551_v32 }
 0x117   :  { %v265_v38 = vmul.f32 %v553_v34, %v246_v23  ;;  %554 = vpow2.f32 %v514_v33  ;;  %vm270_vm1 = vweird.f32 %v553_v34 }
 0x118   :  { %v257_v39 = vsel %vm256_vm15, %v549_v24, %v253_v35  ;;  %556 = vrcp.f32 %v247_v36  ;;  %vm271_vm3 = vmor %vm269_vm2, %vm270_vm1  ;;  %v290_v56 = vand.u32 2147483648, %v247_v36  ;;  %v288_v58 = vand.u32 2147483647, %v247_v36 }
 0x119   :  { %v262_v40 = vsel %vm259_vm0, %v261_v37, %v257_v39  ;;  %v266_v41 = vsub.f32 1.0, %v265_v38  ;;  %vm284_vm6 = vweird.f32 %v247_v36 }
 0x11a   :  { %v309_v42 = vmul.f32 %v262_v40, %v222_v11  ;;  %v291_v61 = vor.u32 1.1754944e-38, %v290_v56  ;;  %vm289_vm8 = vcmp.eq.f32.partialorder %v288_v58, 8.507059e+37  ;;  %v453_v11 = vld [vmem:[%s853_s5 + $0x38] sm:$0xff] }
 0x11b   :  { %v267_v44 = vmul.f32 %v553_v34, %v266_v41  ;;  %478 = vmatpush.msra.mxu2 %v453_v11 }
 0x11c   :  { %515 = vmatmul.msk.f32.vlgmr.msra.gmra.mxu1 %vm170_vm9, %v309_v42 }
 0x11d   :  { %v555_v46 = vpop.eup %554  ;;  %v268_v47 = vadd.f32 %v553_v34, %v267_v44  ;;  %479 = vmatpush.msra.mxu2 %v452_v12 }
 0x11e   :  { %v557_v48 = vpop.eup %556  ;;  %v248_v50 = vadd.f32 1.0, %v555_v46 }
 0x11f   :  { %v272_v51 = vsel %vm271_vm3, %v553_v34, %v268_v47  ;;  %v280_v52 = vmul.f32 %v557_v48, %v247_v36  ;;  %vm285_vm5 = vweird.f32 %v557_v48  ;;  %480 = vmatpush.msra.mxu2 %v451_v13 }
 0x120   :  { %v277_v53 = vsel %vm274_vm4, %v276_v49, %v272_v51  ;;  %558 = vrcp.f32 %v248_v50  ;;  %vm286_vm7 = vmor %vm284_vm6, %vm285_vm5  ;;  %v305_v3 = vand.u32 2147483648, %v248_v50  ;;  %v303_v5 = vand.u32 2147483647, %v248_v50 }
 0x121   :  { %v281_v54 = vsub.f32 1.0, %v280_v52  ;;  %v310_v55 = vmul.f32 %v277_v53, %v225_v15  ;;  %vm299_vm11 = vweird.f32 %v248_v50  ;;  %481 = vmatpush.msra.mxu2 %v450_v14  ;;  %v449_v15 = vld [vmem:[%s853_s5 + $0x18] sm:$0xff] }
 0x122   :  { %v306_v7 = vor.u32 1.1754944e-38, %v305_v3  ;;  %vm304_vm13 = vcmp.eq.f32.partialorder %v303_v5, 8.507059e+37 }
 0x123   :  { %v282_v57 = vmul.f32 %v557_v48, %v281_v54  ;;  %482 = vmatpush.msra.mxu2 %v449_v15 }
 0x124   :  { %516 = vmatmul.msk.f32.gmra.mxu1 %vm170_vm9, %v310_v55 }
 0x125   :  { %v283_v59 = vadd.f32 %v557_v48, %v282_v57  ;;  %483 = vmatpush.msra.mxu2 %v448_v17 }
 0x126   :  { %v559_v60 = vpop.eup %558 }
 0x127   :  { %v287_v62 = vsel %vm286_vm7, %v557_v48, %v283_v59  ;;  %v295_v63 = vmul.f32 %v559_v60, %v248_v50  ;;  %vm300_vm10 = vweird.f32 %v559_v60  ;;  %484 = vmatpush.msra.mxu2 %v447_v18 }
 0x128   :  { %v292_v0 = vsel %vm289_vm8, %v291_v61, %v287_v62  ;;  %vm301_vm12 = vmor %vm299_vm11, %vm300_vm10 }
 0x129   :  { %v296_v1 = vsub.f32 1.0, %v295_v63  ;;  %v311_v2 = vmul.f32 %v292_v0, %v777_v20  ;;  %485 = vmatpush.msra.mxu2 %v446_v21 }
 0x12b   :  { %v297_v4 = vmul.f32 %v559_v60, %v296_v1 }
 0x12c   :  { %517 = vmatmul.msk.f32.gmra.mxu1 %vm170_vm9, %v311_v2 }
 0x12d   :  { %v298_v6 = vadd.f32 %v559_v60, %v297_v4 }
 0x12f   :  { %v302_v8 = vsel %vm301_vm12, %v559_v60, %v298_v6 }
 0x130   :  { %v307_v9 = vsel %vm304_vm13, %v306_v7, %v302_v8 }
 0x131   :  { %v312_v10 = vmul.f32 %v307_v9, %v780_v29 }
 0x134   :  { %518 = vmatmul.msk.f32.gmra.mxu1 %vm170_vm9, %v312_v10 }
 0x199   :  { %v354_v19 = vpop.f32.mrf.mxu1 }
 0x19a   :  { %v355_v20 = vadd.f32 %v542_v16, %v354_v19 }
 0x19c   :  { %v519_v22 = vmul.f32 -1.442695, %v355_v20 }
 0x19e   :  { %560 = vpow2.f32 %v519_v22 }
 0x1a1   :  { %v357_v23 = vpop.f32.mrf.mxu1 }
 0x1a2   :  { %v358_v24 = vadd.f32 %v542_v16, %v357_v23 }
 0x1a4   :  { %v561_v25 = vpop.eup %560  ;;  %v520_v26 = vmul.f32 -1.442695, %v358_v24 }
 0x1a5   :  { %v378_v27 = vadd.f32 1.0, %v561_v25 }
 0x1a6   :  { %562 = vpow2.f32 %v520_v26 }
 0x1a7   :  { %564 = vrcp.f32 %v378_v27  ;;  %v393_v36 = vand.u32 2147483648, %v378_v27  ;;  %v391_v39 = vand.u32 2147483647, %v378_v27  ;;  %vm387_vm15 = vweird.f32 %v378_v27 }
 0x1a9   :  { %v360_v28 = vpop.f32.mrf.mxu1  ;;  %v394_v45 = vor.u32 1.1754944e-38, %v393_v36  ;;  %vm392_vm1 = vcmp.eq.f32.partialorder %v391_v39, 8.507059e+37 }
 0x1aa   :  { %v816_v29 = vadd.f32 %v542_v16, %v360_v28 }
 0x1ac   :  { %v563_v30 = vpop.eup %562  ;;  %v521_v31 = vmul.f32 -1.442695, %v816_v29 }
 0x1ad   :  { %v565_v32 = vpop.eup %564  ;;  %v379_v33 = vadd.f32 1.0, %v563_v30 }
 0x1ae   :  { %v383_v34 = vmul.f32 %v565_v32, %v378_v27  ;;  %566 = vpow2.f32 %v521_v31  ;;  %vm388_vm14 = vweird.f32 %v565_v32 }
 0x1af   :  { %568 = vrcp.f32 %v379_v33  ;;  %vm389_vm0 = vmor %vm387_vm15, %vm388_vm14  ;;  %v408_v52 = vand.u32 2147483648, %v379_v33  ;;  %v406_v54 = vand.u32 2147483647, %v379_v33  ;;  %vm402_vm3 = vweird.f32 %v379_v33 }
 0x1b0   :  { %v384_v35 = vsub.f32 1.0, %v383_v34 }
 0x1b1   :  { %v363_v37 = vpop.f32.mrf.mxu1  ;;  %v409_v58 = vor.u32 1.1754944e-38, %v408_v52  ;;  %vm407_vm5 = vcmp.eq.f32.partialorder %v406_v54, 8.507059e+37 }
 0x1b2   :  { %v385_v38 = vmul.f32 %v565_v32, %v384_v35  ;;  %v819_v40 = vadd.f32 %v542_v16, %v363_v37 }
 0x1b4   :  { %v567_v41 = vpop.eup %566  ;;  %v386_v42 = vadd.f32 %v565_v32, %v385_v38  ;;  %v522_v43 = vmul.f32 -1.442695, %v819_v40 }
 0x1b5   :  { %v569_v44 = vpop.eup %568  ;;  %v380_v46 = vadd.f32 1.0, %v567_v41 }
 0x1b6   :  { %v390_v47 = vsel %vm389_vm0, %v565_v32, %v386_v42  ;;  %v398_v48 = vmul.f32 %v569_v44, %v379_v33  ;;  %570 = vpow2.f32 %v522_v43  ;;  %vm403_vm2 = vweird.f32 %v569_v44 }
 0x1b7   :  { %v395_v49 = vsel %vm392_vm1, %v394_v45, %v390_v47  ;;  %572 = vrcp.f32 %v380_v46  ;;  %vm404_vm4 = vmor %vm402_vm3, %vm403_vm2  ;;  %v423_v1 = vand.u32 2147483648, %v380_v46  ;;  %v421_v3 = vand.u32 2147483647, %v380_v46 }
 0x1b8   :  { %v442_v50 = vmul.f32 %v395_v49, %v355_v20  ;;  %v399_v51 = vsub.f32 1.0, %v398_v48  ;;  %vm417_vm7 = vweird.f32 %v380_v46  ;;  %v543_v20 = vld [vmem:[%s852_s6] ss:$0 sm:$0xff] }
 0x1b9   :  { %v424_v6 = vor.u32 1.1754944e-38, %v423_v1  ;;  %vm422_vm10 = vcmp.eq.f32.partialorder %v421_v3, 8.507059e+37 }
 0x1ba   :  { %v400_v53 = vmul.f32 %v569_v44, %v399_v51  ;;  %523 = vmatmul.msk.f32.vlgmr.msra.gmra.mxu2 %vm170_vm9, %v442_v50 }
 0x1bc   :  { %v571_v55 = vpop.eup %570  ;;  %v401_v56 = vadd.f32 %v569_v44, %v400_v53 }
 0x1bd   :  { %v573_v57 = vpop.eup %572  ;;  %v381_v59 = vadd.f32 1.0, %v571_v55 }
 0x1be   :  { %v405_v60 = vsel %vm404_vm4, %v569_v44, %v401_v56  ;;  %v413_v61 = vmul.f32 %v573_v57, %v380_v46  ;;  %vm418_vm6 = vweird.f32 %v573_v57 }
 0x1bf   :  { %v410_v62 = vsel %vm407_vm5, %v409_v58, %v405_v60  ;;  %574 = vrcp.f32 %v381_v59  ;;  %vm419_vm8 = vmor %vm417_vm7, %vm418_vm6  ;;  %v438_v12 = vand.u32 2147483648, %v381_v59  ;;  %v436_v14 = vand.u32 2147483647, %v381_v59 }
 0x1c0   :  { %v443_v63 = vmul.f32 %v410_v62, %v358_v24  ;;  %v414_v0 = vsub.f32 1.0, %v413_v61  ;;  %vm432_vm12 = vweird.f32 %v381_v59 }
 0x1c1   :  { %v439_v16 = vor.u32 1.1754944e-38, %v438_v12  ;;  %vm437_vm14 = vcmp.eq.f32.partialorder %v436_v14, 8.507059e+37 }
 0x1c2   :  { %v415_v2 = vmul.f32 %v573_v57, %v414_v0  ;;  %524 = vmatmul.msk.f32.gmra.mxu2 %vm170_vm9, %v443_v63 }
 0x1c4   :  { %v416_v4 = vadd.f32 %v573_v57, %v415_v2 }
 0x1c5   :  { %v575_v5 = vpop.eup %574 }
 0x1c6   :  { %v420_v7 = vsel %vm419_vm8, %v573_v57, %v416_v4  ;;  %v428_v8 = vmul.f32 %v575_v5, %v381_v59  ;;  %vm433_vm11 = vweird.f32 %v575_v5 }
 0x1c7   :  { %v425_v9 = vsel %vm422_vm10, %v424_v6, %v420_v7  ;;  %vm434_vm13 = vmor %vm432_vm12, %vm433_vm11 }
 0x1c8   :  { %v444_v10 = vmul.f32 %v425_v9, %v816_v29  ;;  %v429_v11 = vsub.f32 1.0, %v428_v8 }
 0x1ca   :  { %v430_v13 = vmul.f32 %v575_v5, %v429_v11  ;;  %525 = vmatmul.msk.f32.gmra.mxu2 %vm170_vm9, %v444_v10 }
 0x1cc   :  { %v431_v15 = vadd.f32 %v575_v5, %v430_v13 }
 0x1ce   :  { %v435_v17 = vsel %vm434_vm13, %v575_v5, %v431_v15 }
 0x1cf   :  { %v440_v18 = vsel %vm437_vm14, %v439_v16, %v435_v17 }
 0x1d0   :  { %v445_v19 = vmul.f32 %v440_v18, %v819_v40 }
 0x1d2   :  { %526 = vmatmul.msk.f32.gmra.mxu2 %vm170_vm9, %v445_v19 }
 0x23d   :  { %v487_v21 = vpop.f32.mrf.mxu2 }
 0x23e   :  { %v488_v22 = vadd.f32 %v543_v20, %v487_v21 }
 0x240   :  { %499 = vst.msk [vmem:[%s854_s7] sm:$0xff] %vm170_vm9, %v488_v22 }
 0x245   :  { %v490_v23 = vpop.f32.mrf.mxu2 }
 0x246   :  { %v491_v24 = vadd.f32 %v543_v20, %v490_v23 }
 0x248   :  { %500 = vst.msk [vmem:[%s854_s7 + $0x8] sm:$0xff] %vm170_vm9, %v491_v24 }
 0x24d   :  { %v493_v25 = vpop.f32.mrf.mxu2 }
 0x24e   :  { %v494_v26 = vadd.f32 %v543_v20, %v493_v25 }
 0x250   :  { %501 = vst.msk [vmem:[%s854_s7 + $0x10] sm:$0xff] %vm170_vm9, %v494_v26 }
 0x255   :  { %v496_v27 = vpop.f32.mrf.mxu2 }
 0x256   :  { %v497_v28 = vadd.f32 %v543_v20, %v496_v27 }
 0x258   :  { %502 = vst.msk [vmem:[%s854_s7 + $0x18] sm:$0xff] %vm170_vm9, %v497_v28 }

</bundles_post_ra>
